<compile_context>
chip_gen: v6e
topology: v6e:2x2x1
jax: 0.10.0
libtpu: 0.0.40
codegen_flags: <defaults>
</compile_context>

<pallas_src>
import jax
import jax.numpy as jnp
from jax import lax
from jax.experimental import pallas as pl
from jax.experimental.pallas import tpu as pltpu

EPS = 1e-5
NEG_SLOPE = 0.01  # torch.nn.LeakyReLU default
LANES = 128


def _round_up(x, m):
    return (x + m - 1) // m * m


def _conv_stats_kernel(p_ref, w_ref, conv_ref, stats_ref):
    """One M-tile of the im2col matmul + per-tile partial BN stats.

    p_ref:     (TM, K)      bf16   im2col patch rows
    w_ref:     (K, Cpad)    bf16   folded conv weights
    conv_ref:  (TM, Cpad)   f32    conv output tile
    stats_ref: (1, 2, Cpad) f32    per-tile [sum, sum_of_squares] per channel
    """
    acc = jnp.dot(p_ref[...], w_ref[...], preferred_element_type=jnp.float32)
    conv_ref[...] = acc
    s = jnp.sum(acc, axis=0, keepdims=True)            # (1, Cpad)
    ss = jnp.sum(acc * acc, axis=0, keepdims=True)     # (1, Cpad)
    stats_ref[0, :, :] = jnp.concatenate([s, ss], axis=0)


def _bn_lrelu_kernel(conv_ref, sb_ref, o_ref):
    """Apply folded BN (scale/bias) + LeakyReLU to one M-tile.

    conv_ref: (TM, Cpad) f32
    sb_ref:   (2, Cpad)  f32   row 0 = scale, row 1 = bias
    o_ref:    (TM, Cpad) out dtype
    """
    scale = sb_ref[0:1, :]
    bias = sb_ref[1:2, :]
    y = conv_ref[...] * scale + bias
    o_ref[...] = jnp.where(y >= 0.0, y, NEG_SLOPE * y).astype(o_ref.dtype)


def cnn_block_forward(x_nchw, weight_oihw, gamma, beta, *, tile_m=128,
                      compute_dtype=jnp.bfloat16):
    """x_nchw: (N, Cin, H, W); weight_oihw: (Cout, Cin, KH, KW); gamma/beta: (Cout,)."""
    n, cin, h, w = x_nchw.shape
    cout, cin_w, kh, kw = weight_oihw.shape
    assert cin == cin_w
    ho, wo = h - kh + 1, w - kw + 1

    m = n * ho * wo                    # flattened output positions
    k9 = kh * kw * cin                 # folded contraction depth (im2col)
    cp = _round_up(cout, LANES)        # lane-dense output channels

    tm = min(tile_m, _round_up(m, 8))  # M-tile (multiple of 8 sublanes)
    m_pad = _round_up(m, tm)
    grid_m = m_pad // tm

    # ---- layout / im2col glue (plain JAX). Zero-padded rows/channels contribute 0
    #      to the conv and to sum/sumsq, so BN stats (divided by true m) stay exact.
    x_nhwc = jnp.transpose(x_nchw, (0, 2, 3, 1))                       # (N, H, W, Cin)
    cols = [x_nhwc[:, i:i + ho, j:j + wo, :] for i in range(kh) for j in range(kw)]
    patches = jnp.concatenate(cols, axis=-1).reshape(m, k9)            # (M, KH*KW*Cin), (i,j,c) order
    patches = jnp.pad(patches, ((0, m_pad - m), (0, 0))).astype(compute_dtype)

    w2 = jnp.transpose(weight_oihw, (2, 3, 1, 0)).reshape(k9, cout)    # (i,j,c) x Cout
    w2 = jnp.pad(w2, ((0, 0), (0, cp - cout))).astype(compute_dtype)

    itemsize = jnp.dtype(compute_dtype).itemsize
    cparams = pltpu.CompilerParams(dimension_semantics=("parallel",),
                                   vmem_limit_bytes=32 * 1024 * 1024)

    # ---- pass 1: one big MXU matmul per tile + partial per-channel stats ----
    conv_out, partial_stats = pl.pallas_call(
        _conv_stats_kernel,
        out_shape=(jax.ShapeDtypeStruct((m_pad, cp), jnp.float32),
                   jax.ShapeDtypeStruct((grid_m, 2, cp), jnp.float32)),
        grid_spec=pltpu.PrefetchScalarGridSpec(
            num_scalar_prefetch=0,
            grid=(grid_m,),
            in_specs=[pl.BlockSpec((tm, k9), lambda i: (i, 0)),
                      pl.BlockSpec((k9, cp), lambda i: (0, 0))],
            out_specs=(pl.BlockSpec((tm, cp), lambda i: (i, 0)),
                       pl.BlockSpec((1, 2, cp), lambda i: (i, 0, 0))),
        ),
        compiler_params=cparams,
        cost_estimate=pl.CostEstimate(
            flops=2 * m_pad * k9 * cp,
            transcendentals=0,
            bytes_accessed=(m_pad * k9 + k9 * cp) * itemsize
                           + (m_pad * cp + grid_m * 2 * cp) * 4),
    )(patches, w2)

    # ---- global BN stats + folded scale/bias (tiny; plain JAX) ----
    stats = jnp.sum(partial_stats, axis=0)          # (2, Cpad)
    mean = stats[0] / m
    var = jnp.maximum(stats[1] / m - mean * mean, 0.0)   # biased var (PyTorch train-mode)
    gamma_p = jnp.pad(gamma.astype(jnp.float32), (0, cp - cout))
    beta_p = jnp.pad(beta.astype(jnp.float32), (0, cp - cout))
    scale = gamma_p * lax.rsqrt(var + EPS)
    bias = beta_p - mean * scale
    scale_bias = jnp.stack([scale, bias], axis=0)   # (2, Cpad)
    # TODO(synk): nn.BatchNorm2d also updates running_mean/running_var buffers in
    # training; that bookkeeping does not affect the forward output and is omitted.

    # ---- pass 2: normalize + LeakyReLU (lane-dense epilogue) ----
    out_padded = pl.pallas_call(
        _bn_lrelu_kernel,
        out_shape=jax.ShapeDtypeStruct((m_pad, cp), x_nchw.dtype),
        grid_spec=pltpu.PrefetchScalarGridSpec(
            num_scalar_prefetch=0,
            grid=(grid_m,),
            in_specs=[pl.BlockSpec((tm, cp), lambda i: (i, 0)),
                      pl.BlockSpec((2, cp), lambda i: (0, 0))],
            out_specs=pl.BlockSpec((tm, cp), lambda i: (i, 0)),
        ),
        compiler_params=cparams,
        cost_estimate=pl.CostEstimate(
            flops=3 * m_pad * cp,
            transcendentals=0,
            bytes_accessed=2 * m_pad * cp * 4 + 2 * cp * 4),
    )(conv_out, scale_bias)

    out = out_padded[:m, :cout].reshape(n, ho, wo, cout)
    return jnp.transpose(out, (0, 3, 1, 2))         # back to NCHW (PyTorch contract)


def _reference(x_nchw, weight_oihw, gamma, beta):
    """Pure-JAX f32 reference matching the PyTorch module in training mode."""
    conv = lax.conv_general_dilated(
        x_nchw, weight_oihw, window_strides=(1, 1), padding="VALID",
        dimension_numbers=("NCHW", "OIHW", "NCHW"),
    )
    mean = jnp.mean(conv, axis=(0, 2, 3), keepdims=True)
    var = jnp.mean((conv - mean) ** 2, axis=(0, 2, 3), keepdims=True)
    xhat = (conv - mean) / jnp.sqrt(var + EPS)
    y = xhat * gamma.reshape(1, -1, 1, 1) + beta.reshape(1, -1, 1, 1)
    return jnp.where(y >= 0.0, y, NEG_SLOPE * y)


if __name__ == "__main__":
    key = jax.random.PRNGKey(0)
    k_x, k_w, k_g, k_b = jax.random.split(key, 4)

    N, CIN, COUT, H, W, K = 2, 4, 8, 16, 16, 3

    x = jax.random.normal(k_x, (N, CIN, H, W), dtype=jnp.float32)
    weight = jax.random.normal(k_w, (COUT, CIN, K, K), dtype=jnp.float32) * 0.1
    gamma = 1.0 + 0.1 * jax.random.normal(k_g, (COUT,), dtype=jnp.float32)
    beta = 0.1 * jax.random.normal(k_b, (COUT,), dtype=jnp.float32)

    fwd = jax.jit(cnn_block_forward)
    out = jax.block_until_ready(fwd(x, weight, gamma, beta))
    ref = _reference(x, weight, gamma, beta)

    assert out.shape == (N, COUT, H - K + 1, W - K + 1)
    # Tolerance accounts for bf16 MXU inputs (f32 accumulation); f32 reference.
    err = float(jnp.max(jnp.abs(out - ref)))
    assert jnp.allclose(out, ref, atol=5e-2, rtol=5e-2), err

    print("KERNEL_OK")
</pallas_src>

<mosaic_0001>
module attributes {stable_mosaic.version = 11 : i64} {
  func.func @_conv_stats_kernel(%arg0: i32, %arg1: memref<128x36xbf16, #tpu.memory_space<vmem>>, %arg2: memref<36x128xbf16, #tpu.memory_space<vmem>>, %arg3: memref<128x128xf32, #tpu.memory_space<vmem>>, %arg4: memref<1x2x128xf32, #tpu.memory_space<vmem>>) attributes {dimension_semantics = [#tpu.dimension_semantics<parallel>], iteration_bounds = array<i64: 4>, scalar_prefetch = 0 : i64, scratch_operands = 0 : i64, tpu.core_type = #tpu.core_type<tc>, window_params = [{transform_indices = @transform_0, window_bounds = array<i64: 128, 36>}, {pipeline_mode = #tpu.pipeline_mode<synchronous>, transform_indices = @transform_1, window_bounds = array<i64: 36, 128>}, {transform_indices = @transform_2, window_bounds = array<i64: 128, 128>}, {transform_indices = @transform_3, window_bounds = array<i64: 1, 2, 128>}]} {
    %c0 = arith.constant 0 : index
    %c0_0 = arith.constant 0 : index
    %0 = vector.load %arg1[%c0, %c0_0] : memref<128x36xbf16, #tpu.memory_space<vmem>>, vector<128x36xbf16>
    %c0_1 = arith.constant 0 : index
    %c0_2 = arith.constant 0 : index
    %1 = vector.load %arg2[%c0_1, %c0_2] : memref<36x128xbf16, #tpu.memory_space<vmem>>, vector<36x128xbf16>
    %cst = arith.constant dense<0.000000e+00> : vector<128x128xf32>
    %2 = tpu.matmul %0, %1, %cst {dimension_numbers = #tpu.dot_dimension_numbers<[1], [0], [0], [1], [0, 0, 1, 1], [], []>} : vector<128x36xbf16>, vector<36x128xbf16>, vector<128x128xf32> -> vector<128x128xf32>
    %c0_3 = arith.constant 0 : index
    %c0_4 = arith.constant 0 : index
    %3 = vector.load %arg3[%c0_3, %c0_4] : memref<128x128xf32, #tpu.memory_space<vmem>>, vector<128x128xf32>
    tpu.vector_store %arg3[%c0_3, %c0_4], %2 {strides = array<i32>} : memref<128x128xf32, #tpu.memory_space<vmem>>, vector<128x128xf32>,
    %cst_5 = arith.constant dense<0.000000e+00> : vector<128xf32>
    %4 = vector.multi_reduction <add>, %2, %cst_5 [0] : vector<128x128xf32> to vector<128xf32>
    %5 = vector.shape_cast %4 : vector<128xf32> to vector<1x128xf32>
    %6 = arith.mulf %2, %2 : vector<128x128xf32>
    %cst_6 = arith.constant dense<0.000000e+00> : vector<128xf32>
    %7 = vector.multi_reduction <add>, %6, %cst_6 [0] : vector<128x128xf32> to vector<128xf32>
    %8 = vector.shape_cast %7 : vector<128xf32> to vector<1x128xf32>
    %9 = tpu.concatenate %5, %8 in 0 : vector<1x128xf32>, vector<1x128xf32> -> vector<2x128xf32>
    %c0_7 = arith.constant 0 : index
    %c0_8 = arith.constant 0 : index
    %c0_9 = arith.constant 0 : index
    %10 = vector.load %arg4[%c0_7, %c0_8, %c0_9] : memref<1x2x128xf32, #tpu.memory_space<vmem>>, vector<1x2x128xf32>
    %11 = vector.shape_cast %10 : vector<1x2x128xf32> to vector<2x128xf32>
    %12 = vector.shape_cast %9 : vector<2x128xf32> to vector<1x2x128xf32>
    tpu.vector_store %arg4[%c0_7, %c0_8, %c0_9], %12 {strides = array<i32>} : memref<1x2x128xf32, #tpu.memory_space<vmem>>, vector<1x2x128xf32>,
    return
  }
  func.func @transform_0(%arg0: i32) -> (i32, i32) {
    %c0_i32 = arith.constant 0 : i32
    %c0_i32_0 = arith.constant 0 : i32
    return %arg0, %c0_i32 : i32, i32
  }
  func.func @transform_1(%arg0: i32) -> (i32, i32) {
    %c0_i32 = arith.constant 0 : i32
    %c0_i32_0 = arith.constant 0 : i32
    %c0_i32_1 = arith.constant 0 : i32
    return %c0_i32, %c0_i32_0 : i32, i32
  }
  func.func @transform_2(%arg0: i32) -> (i32, i32) {
    %c0_i32 = arith.constant 0 : i32
    %c0_i32_0 = arith.constant 0 : i32
    return %arg0, %c0_i32 : i32, i32
  }
  func.func @transform_3(%arg0: i32) -> (i32, i32, i32) {
    %c0_i32 = arith.constant 0 : i32
    %c0_i32_0 = arith.constant 0 : i32
    %c0_i32_1 = arith.constant 0 : i32
    return %arg0, %c0_i32, %c0_i32_0 : i32, i32, i32
  }
}

module attributes {stable_mosaic.version = 11 : i64} {
  func.func @_bn_lrelu_kernel(%arg0: i32, %arg1: memref<128x128xf32, #tpu.memory_space<vmem>>, %arg2: memref<2x128xf32, #tpu.memory_space<vmem>>, %arg3: memref<128x128xf32, #tpu.memory_space<vmem>>) attributes {dimension_semantics = [#tpu.dimension_semantics<parallel>], iteration_bounds = array<i64: 4>, scalar_prefetch = 0 : i64, scratch_operands = 0 : i64, tpu.core_type = #tpu.core_type<tc>, window_params = [{transform_indices = @transform_0, window_bounds = array<i64: 128, 128>}, {pipeline_mode = #tpu.pipeline_mode<synchronous>, transform_indices = @transform_1, window_bounds = array<i64: 2, 128>}, {transform_indices = @transform_2, window_bounds = array<i64: 128, 128>}]} {
    %c0 = arith.constant 0 : index
    %c0_0 = arith.constant 0 : index
    %0 = vector.load %arg2[%c0, %c0_0] : memref<2x128xf32, #tpu.memory_space<vmem>>, vector<1x128xf32>
    %c1 = arith.constant 1 : index
    %c0_1 = arith.constant 0 : index
    %1 = vector.load %arg2[%c1, %c0_1] : memref<2x128xf32, #tpu.memory_space<vmem>>, vector<1x128xf32>
    %c0_2 = arith.constant 0 : index
    %c0_3 = arith.constant 0 : index
    %2 = vector.load %arg1[%c0_2, %c0_3] : memref<128x128xf32, #tpu.memory_space<vmem>>, vector<128x128xf32>
    %3 = vector.broadcast %0 : vector<1x128xf32> to vector<128x128xf32>
    %4 = arith.mulf %2, %3 : vector<128x128xf32>
    %5 = vector.broadcast %1 : vector<1x128xf32> to vector<128x128xf32>
    %6 = arith.addf %4, %5 : vector<128x128xf32>
    %cst = arith.constant 0.000000e+00 : f32
    %7 = vector.broadcast %cst : f32 to vector<128x128xf32>
    %8 = arith.cmpf oge, %6, %7 : vector<128x128xf32>
    %cst_4 = arith.constant 0.00999999977 : f32
    %9 = vector.broadcast %cst_4 : f32 to vector<128x128xf32>
    %10 = arith.mulf %9, %6 : vector<128x128xf32>
    %11 = arith.select %8, %6, %10 : vector<128x128xi1>, vector<128x128xf32>
    %c0_5 = arith.constant 0 : index
    %c0_6 = arith.constant 0 : index
    %12 = vector.load %arg3[%c0_5, %c0_6] : memref<128x128xf32, #tpu.memory_space<vmem>>, vector<128x128xf32>
    tpu.vector_store %arg3[%c0_5, %c0_6], %11 {strides = array<i32>} : memref<128x128xf32, #tpu.memory_space<vmem>>, vector<128x128xf32>,
    return
  }
  func.func @transform_0(%arg0: i32) -> (i32, i32) {
    %c0_i32 = arith.constant 0 : i32
    %c0_i32_0 = arith.constant 0 : i32
    return %arg0, %c0_i32 : i32, i32
  }
  func.func @transform_1(%arg0: i32) -> (i32, i32) {
    %c0_i32 = arith.constant 0 : i32
    %c0_i32_0 = arith.constant 0 : i32
    %c0_i32_1 = arith.constant 0 : i32
    return %c0_i32, %c0_i32_0 : i32, i32
  }
  func.func @transform_2(%arg0: i32) -> (i32, i32) {
    %c0_i32 = arith.constant 0 : i32
    %c0_i32_0 = arith.constant 0 : i32
    return %arg0, %c0_i32 : i32, i32
  }
}

</mosaic_0001>

<bundles_post_ra>
// kernel: cnn_block_forward.3
= control target key start
LH: loop header
LB: loop body
LE: loop exit
PB: predicated region body
PF: predicated region fallthrough
CT: control target
= control target key end

     0   :  { %s369_s9 = smov 0   ;;  %s467_s0 = inlined_call_operand.vmem [shape: f32[512,128], index: 0, kind: input, shape index: {}]   ;;  %s468_s1 = inlined_call_operand.vmem [shape: f32[2,128], index: 1, kind: input, shape index: {}]   ;;  %s469_s2 = inlined_call_operand.vmem [shape: f32[512,128], index: 2, kind: output, shape index: {}]  }
   0x1 LB: > { %s325_s10 = sadd.s32 4294967295, %s352_s9   ;;  %p329_p0 = scmp.ge.s32.totalorder %s352_s9, 1  ;;  %s352_s9 = sphi %s369_s9, %s12_s9  }
   0x2   : > { %p113_p1 = scmp.lt.s32.totalorder %s352_s9, 5 }
   0x4   : > { %p114_p2 = pnand %p329_p0, %p113_p1 }
   0x5   : > { %s330_s11 = sshll.u32 (!%p114_p2), %s325_s10, 4 }
   0x6   : > { %117 = sbr.rel (%p114_p2) target bundleno = 40 (0x28), region = 28  ;;  %p136_p3 = scmp.lt.s32.totalorder (!%p114_p2), %s330_s11, 63 }
   0xb   : > { %s471_s11 = smov (!%p136_p3, %s330_s11), 63  ;;  %v383_v0 = vld [vmem:[%s468_s1] ss:$0 sm:$0xff]  ;;  %v393_v1 = vld [vmem:[%s468_s1 + $0x1] ss:$0 sm:$0xff] }
   0xc   : > { %s331_s12 = sshll.u32 %s471_s11, 3 }
   0xd   : > { %s388_s17 = scalar_lea.vmem %s467_s0, %s331_s12  ;;  %s421_s22 = scalar_lea.vmem %s469_s2, %s331_s12 }
   0xe   : > { %v149_v2 = vld [vmem:[%s388_s17] sm:$0xff]  ;;  %v150_v3 = vld [vmem:[%s388_s17 + $0x8] sm:$0xff]  ;;  %v151_v4 = vld [vmem:[%s388_s17 + $0x10] sm:$0xff] }
   0xf   : > { %v169_v5 = vmul.f32 %v383_v0, %v149_v2  ;;  %v170_v6 = vmul.f32 %v383_v0, %v150_v3  ;;  %v171_v7 = vmul.f32 %v383_v0, %v151_v4  ;;  %v152_v8 = vld [vmem:[%s388_s17 + $0x18] sm:$0xff]  ;;  %v153_v9 = vld [vmem:[%s388_s17 + $0x20] sm:$0xff]  ;;  %v154_v10 = vld [vmem:[%s388_s17 + $0x28] sm:$0xff] }
  0x10   : > { %v172_v11 = vmul.f32 %v383_v0, %v152_v8  ;;  %v173_v12 = vmul.f32 %v383_v0, %v153_v9  ;;  %v174_v13 = vmul.f32 %v383_v0, %v154_v10  ;;  %v155_v14 = vld [vmem:[%s388_s17 + $0x30] sm:$0xff]  ;;  %v156_v15 = vld [vmem:[%s388_s17 + $0x38] sm:$0xff]  ;;  %v157_v24 = vld [vmem:[%s388_s17 + $0x40] sm:$0xff] }
  0x11   : > { %v189_v16 = vadd.f32 %v393_v1, %v169_v5  ;;  %v190_v17 = vadd.f32 %v393_v1, %v170_v6  ;;  %v191_v18 = vadd.f32 %v393_v1, %v171_v7  ;;  %v175_v19 = vmul.f32 %v383_v0, %v155_v14  ;;  %v158_v32 = vld [vmem:[%s388_s17 + $0x48] sm:$0xff]  ;;  %v159_v33 = vld [vmem:[%s388_s17 + $0x50] sm:$0xff]  ;;  %v160_v34 = vld [vmem:[%s388_s17 + $0x58] sm:$0xff] }
  0x12   : > { %v192_v20 = vadd.f32 %v393_v1, %v172_v11  ;;  %v193_v21 = vadd.f32 %v393_v1, %v173_v12  ;;  %v194_v22 = vadd.f32 %v393_v1, %v174_v13  ;;  %v176_v23 = vmul.f32 %v383_v0, %v156_v15  ;;  %v161_v46 = vld [vmem:[%s388_s17 + $0x60] sm:$0xff]  ;;  %v162_v47 = vld [vmem:[%s388_s17 + $0x68] sm:$0xff]  ;;  %v163_v58 = vld [vmem:[%s388_s17 + $0x70] sm:$0xff] }
  0x13   : > { %vm205_vm0 = vcmp.ge.f32.partialorder %v189_v16, 0.0  ;;  %v221_v25 = vmul.f32 0.01, %v189_v16  ;;  %vm206_vm1 = vcmp.ge.f32.partialorder %v190_v17, 0.0  ;;  %v222_v26 = vmul.f32 0.01, %v190_v17 }
  0x14   : > { %vm207_vm2 = vcmp.ge.f32.partialorder %v191_v18, 0.0  ;;  %v223_v27 = vmul.f32 0.01, %v191_v18  ;;  %vm208_vm3 = vcmp.ge.f32.partialorder %v192_v20, 0.0  ;;  %v224_v28 = vmul.f32 0.01, %v192_v20 }
  0x15   : > { %v237_v29 = vsel %vm205_vm0, %v189_v16, %v221_v25  ;;  %v238_v30 = vsel %vm206_vm1, %v190_v17, %v222_v26  ;;  %vm209_vm4 = vcmp.ge.f32.partialorder %v193_v21, 0.0  ;;  %v225_v31 = vmul.f32 0.01, %v193_v21  ;;  %v164_v59 = vld [vmem:[%s388_s17 + $0x78] sm:$0xff] }
  0x16   : > { %253 = vst [vmem:[%s421_s22] sm:$0xff] %v237_v29  ;;  %254 = vst [vmem:[%s421_s22 + $0x8] sm:$0xff] %v238_v30  ;;  %v239_v35 = vsel %vm207_vm2, %v191_v18, %v223_v27  ;;  %v240_v36 = vsel %vm208_vm3, %v192_v20, %v224_v28  ;;  %vm210_vm5 = vcmp.ge.f32.partialorder %v194_v22, 0.0  ;;  %v226_v37 = vmul.f32 0.01, %v194_v22 }
  0x17   : > { %255 = vst [vmem:[%s421_s22 + $0x10] sm:$0xff] %v239_v35  ;;  %256 = vst [vmem:[%s421_s22 + $0x18] sm:$0xff] %v240_v36  ;;  %v241_v38 = vsel %vm209_vm4, %v193_v21, %v225_v31  ;;  %v195_v39 = vadd.f32 %v393_v1, %v175_v19  ;;  %v196_v40 = vadd.f32 %v393_v1, %v176_v23 }
  0x18   : > { %v177_v41 = vmul.f32 %v383_v0, %v157_v24  ;;  %257 = vst [vmem:[%s421_s22 + $0x20] sm:$0xff] %v241_v38  ;;  %v242_v42 = vsel %vm210_vm5, %v194_v22, %v226_v37  ;;  %v178_v43 = vmul.f32 %v383_v0, %v158_v32  ;;  %v179_v44 = vmul.f32 %v383_v0, %v159_v33 }
  0x19   : > { %v180_v45 = vmul.f32 %v383_v0, %v160_v34  ;;  %258 = vst [vmem:[%s421_s22 + $0x28] sm:$0xff] %v242_v42  ;;  %vm211_vm6 = vcmp.ge.f32.partialorder %v195_v39, 0.0  ;;  %v227_v48 = vmul.f32 0.01, %v195_v39  ;;  %vm212_vm7 = vcmp.ge.f32.partialorder %v196_v40, 0.0 }
  0x1a   : > { %v228_v49 = vmul.f32 0.01, %v196_v40  ;;  %v197_v50 = vadd.f32 %v393_v1, %v177_v41  ;;  %v198_v51 = vadd.f32 %v393_v1, %v178_v43  ;;  %v199_v52 = vadd.f32 %v393_v1, %v179_v44 }
  0x1b   : > { %v200_v53 = vadd.f32 %v393_v1, %v180_v45  ;;  %v243_v54 = vsel %vm211_vm6, %v195_v39, %v227_v48  ;;  %v181_v56 = vmul.f32 %v383_v0, %v161_v46  ;;  %v182_v57 = vmul.f32 %v383_v0, %v162_v47 }
  0x1c   : > { %v244_v55 = vsel %vm212_vm7, %v196_v40, %v228_v49  ;;  %259 = vst [vmem:[%s421_s22 + $0x30] sm:$0xff] %v243_v54  ;;  %vm213_vm8 = vcmp.ge.f32.partialorder %v197_v50, 0.0  ;;  %v229_v60 = vmul.f32 0.01, %v197_v50  ;;  %vm214_vm9 = vcmp.ge.f32.partialorder %v198_v51, 0.0 }
  0x1d   : > { %260 = vst [vmem:[%s421_s22 + $0x38] sm:$0xff] %v244_v55  ;;  %v230_v61 = vmul.f32 0.01, %v198_v51  ;;  %vm215_vm10 = vcmp.ge.f32.partialorder %v199_v52, 0.0  ;;  %v231_v62 = vmul.f32 0.01, %v199_v52  ;;  %v201_v4 = vadd.f32 %v393_v1, %v181_v56 }
  0x1e   : > { %vm216_vm11 = vcmp.ge.f32.partialorder %v200_v53, 0.0  ;;  %v232_v63 = vmul.f32 0.01, %v200_v53  ;;  %v245_v2 = vsel %vm213_vm8, %v197_v50, %v229_v60  ;;  %v202_v5 = vadd.f32 %v393_v1, %v182_v57 }
  0x1f   : > { %v246_v3 = vsel %vm214_vm9, %v198_v51, %v230_v61  ;;  %261 = vst [vmem:[%s421_s22 + $0x40] sm:$0xff] %v245_v2  ;;  %v247_v6 = vsel %vm215_vm10, %v199_v52, %v231_v62  ;;  %v183_v8 = vmul.f32 %v383_v0, %v163_v58  ;;  %v184_v9 = vmul.f32 %v383_v0, %v164_v59 }
  0x20   : > { %262 = vst [vmem:[%s421_s22 + $0x48] sm:$0xff] %v246_v3  ;;  %v248_v7 = vsel %vm216_vm11, %v200_v53, %v232_v63  ;;  %263 = vst [vmem:[%s421_s22 + $0x50] sm:$0xff] %v247_v6  ;;  %vm217_vm12 = vcmp.ge.f32.partialorder %v201_v4, 0.0  ;;  %v233_v10 = vmul.f32 0.01, %v201_v4  ;;  %vm218_vm13 = vcmp.ge.f32.partialorder %v202_v5, 0.0 }
  0x21   : > { %264 = vst [vmem:[%s421_s22 + $0x58] sm:$0xff] %v248_v7  ;;  %v234_v11 = vmul.f32 0.01, %v202_v5  ;;  %v203_v12 = vadd.f32 %v393_v1, %v183_v8  ;;  %v204_v13 = vadd.f32 %v393_v1, %v184_v9 }
  0x22   : > { %v249_v14 = vsel %vm217_vm12, %v201_v4, %v233_v10 }
  0x23   : > { %v250_v15 = vsel %vm218_vm13, %v202_v5, %v234_v11  ;;  %265 = vst [vmem:[%s421_s22 + $0x60] sm:$0xff] %v249_v14  ;;  %vm219_vm14 = vcmp.ge.f32.partialorder %v203_v12, 0.0  ;;  %v235_v16 = vmul.f32 0.01, %v203_v12  ;;  %vm220_vm15 = vcmp.ge.f32.partialorder %v204_v13, 0.0 }
  0x24   : > { %266 = vst [vmem:[%s421_s22 + $0x68] sm:$0xff] %v250_v15  ;;  %v236_v0 = vmul.f32 0.01, %v204_v13 }
  0x25   : > { %v251_v17 = vsel %vm219_vm14, %v203_v12, %v235_v16 }
  0x26   : > { %v252_v18 = vsel %vm220_vm15, %v204_v13, %v236_v0  ;;  %267 = vst [vmem:[%s421_s22 + $0x70] sm:$0xff] %v251_v17 }
  0x27   : > { %268 = vst [vmem:[%s421_s22 + $0x78] sm:$0xff] %v252_v18 }
  0x28 PF: > { %s12_s9 = sadd.s32 1, %s352_s9  }
  0x29   : > { %p9_p4 = scmp.ge.s32.totalorder %s12_s9, 6  }
  0x2b   :  { %11 = sbr.rel (!%p9_p4) target bundleno = 1 (0x1), region = 58 }

// kernel: cnn_block_forward.2
= control target key start
LH: loop header
LB: loop body
LE: loop exit
PB: predicated region body
PF: predicated region fallthrough
CT: control target
= control target key end

     0   :  { %s671_s12 = smov 0   ;;  %s731_s0 = inlined_call_operand.vmem [shape: bf16[512,36], index: 0, kind: input, shape index: {}]   ;;  %s732_s1 = inlined_call_operand.vmem [shape: bf16[36,128], index: 1, kind: input, shape index: {}]   ;;  %s733_s2 = inlined_call_operand.vmem [shape: f32[512,128], index: 2, kind: output, shape index: {0}]   ;;  %s734_s3 = inlined_call_operand.vmem [shape: f32[4,2,128], index: 3, kind: output, shape index: {1}]  }
   0x1 LB: > { %s677_s13 = sadd.s32 4294967295, %s649_s12   ;;  %p556_p0 = scmp.ge.s32.totalorder %s649_s12, 1  ;;  %s649_s12 = sphi %s671_s12, %s14_s12  }
   0x2   : > { %p141_p1 = scmp.lt.s32.totalorder %s649_s12, 5 }
   0x4   : > { %p142_p2 = pnand %p556_p0, %p141_p1 }
   0x5   : > { %s557_s18 = sshll.u32 (!%p142_p2), %s677_s13, 4  ;;  %p181_p4 = scmp.lt.s32.totalorder (!%p142_p2), %s677_s13, 3 }
   0x6   : > { %145 = sbr.rel (%p142_p2) target bundleno = 269 (0x10d), region = 28  ;;  %p170_p3 = scmp.lt.s32.totalorder (!%p142_p2), %s557_s18, 63 }
   0xb   : > { %v632_v0 = vld [vmem:[%s732_s1 + $0x10] ss:$0 sps:$4 sm:$0x33]   ;;  %vm287_vm0 = vcmask 1041408   ;;  %v633_v1 = vld [vmem:[%s732_s1 + $0x8] sm:$0xff]   ;;  %v634_v3 = vld [vmem:[%s732_s1] sm:$0xff]  }
   0xc   : > { %622 = vmatprep.subr.msk.bf16.mxu0 %vm287_vm0, %v632_v0  ;;  %v289_v2 = vsel %vm287_vm0, %v632_v0, 0  ;;  %623 = vmatprep.subr.msk.bf16.mxu1 %vm287_vm0, %v632_v0  ;;  %s736_s18 = smov (!%p170_p3, %s557_s18), 63  ;;  %vm262_vm1 = vcmask 293888   ;;  %s738_s13 = smov (!%p181_p4, %s677_s13), 3  ;;  %vm462_vm2 = vcmask 1040384  }
   0xd   : > { %595 = vmatpush3.bf16.msra.mxu0 %v289_v2  ;;  %619 = vmatpush3.bf16.msra.mxu1 %v289_v2  ;;  %s558_s21 = sshll.u32 %s736_s18, 2  ;;  %s560_s25 = sshll.u32 %s736_s18, 3 }
   0xe   : > { %596 = vmatprep.subr.bf16.mxu0 %v633_v1  ;;  %617 = vmatprep.subr.bf16.mxu1 %v633_v1  ;;  %s173_s24 = scalar_lea.vmem %s731_s0, %s558_s21  ;;  %s705_s28 = scalar_lea.vmem %s733_s2, %s560_s25 }
   0xf   : > { %v635_v4 = vld [vmem:[%s173_s24] sm:$0xff]   ;;  %v636_v5 = vld [vmem:[%s173_s24 + $0x8] sm:$0xff]   ;;  %v637_v6 = vld [vmem:[%s173_s24 + $0x10] sm:$0xff]   ;;  %s561_s29 = sshll.u32 %s738_s13, 1 }
  0x10   : > { %600 = vmatprep.mubr.msk.bf16.mxu0 %vm262_vm1, %v635_v4  ;;  %v639_v7 = vld [vmem:[%s173_s24 + $0x20] sm:$0xff]   ;;  %v640_v8 = vld [vmem:[%s173_s24 + $0x28] sm:$0xff]   ;;  %v641_v9 = vld [vmem:[%s173_s24 + $0x30] sm:$0xff]   ;;  %s184_s5 = scalar_lea.vmem %s734_s3, %s561_s29 }
  0x11   : > { %597 = vmatpush3.bf16.msra.mxu0 %v633_v1  ;;  %620 = vmatpush3.bf16.msra.mxu1 %v633_v1  ;;  %v638_v10 = vld [vmem:[%s173_s24 + $0x18] sm:$0xff]  }
  0x12   : > { %598 = vmatprep.subr.bf16.mxu0 %v634_v3  ;;  %618 = vmatprep.subr.bf16.mxu1 %v634_v3  ;;  %v642_v11 = vld [vmem:[%s173_s24 + $0x38] sm:$0xff]  }
  0x13   : > { %608 = vmatprep.mubr.msk.bf16.mxu1 %vm262_vm1, %v639_v7 }
  0x15   : > { %599 = vmatpush3.bf16.msra.mxu0 %v634_v3  ;;  %621 = vmatpush3.bf16.msra.mxu1 %v634_v3 }
  0x18   : > { %601 = vmatmul.mubr.msk.bf16.vlgmr.msra.gmra.mxu0 %vm262_vm1, %v636_v5  ;;  %609 = vmatmul.mubr.msk.bf16.vlgmr.msra.gmra.mxu1 %vm262_vm1, %v640_v8 }
  0x19   : > { %604 = vmatprep.mubr.msk.bf16.mxu0 %vm262_vm1, %v637_v6  ;;  %612 = vmatprep.mubr.msk.bf16.mxu1 %vm262_vm1, %v641_v9 }
  0x20   : > { %605 = vmatmul.mubr.msk.bf16.gmra.mxu0 %vm262_vm1, %v638_v10  ;;  %613 = vmatmul.mubr.msk.bf16.gmra.mxu1 %vm262_vm1, %v642_v11 }
  0xd8   : > { %v602_v12 = vpop.f32.mrf.mxu0  ;;  %v610_v14 = vpop.f32.mrf.mxu1 }
  0xd9   : > { %390 = vst [vmem:[%s705_s28 + $0x10] sm:$0xff] %v602_v12  ;;  %398 = vst [vmem:[%s705_s28 + $0x50] sm:$0xff] %v610_v14  ;;  %v427_v24 = vmul.f32 %v602_v12, %v602_v12  ;;  %v435_v55 = vmul.f32 %v610_v14, %v610_v14 }
  0xda   : > { %v325_v13 = vpop.f32.mrf.mxu0  ;;  %v357_v16 = vpop.f32.mrf.mxu1 }
  0xdb   : > { %388 = vst [vmem:[%s705_s28] sm:$0xff] %v325_v13  ;;  %396 = vst [vmem:[%s705_s28 + $0x40] sm:$0xff] %v357_v16  ;;  %v425_v19 = vmul.f32 %v325_v13, %v325_v13  ;;  %v433_v49 = vmul.f32 %v357_v16, %v357_v16 }
  0xdc   : > { %v603_v15 = vpop.f32.mrf.mxu0  ;;  %v611_v18 = vpop.f32.mrf.mxu1 }
  0xdd   : > { %391 = vst [vmem:[%s705_s28 + $0x18] sm:$0xff] %v603_v15  ;;  %399 = vst [vmem:[%s705_s28 + $0x58] sm:$0xff] %v611_v18  ;;  %v428_v29 = vmul.f32 %v603_v15, %v603_v15  ;;  %v436_v58 = vmul.f32 %v611_v18, %v611_v18 }
  0xde   : > { %v328_v17 = vpop.f32.mrf.mxu0  ;;  %v360_v23 = vpop.f32.mrf.mxu1 }
  0xdf   : > { %389 = vst [vmem:[%s705_s28 + $0x8] sm:$0xff] %v328_v17  ;;  %v404_v20 = vadd.f32 %v328_v17, %v325_v13  ;;  %v426_v21 = vmul.f32 %v328_v17, %v328_v17  ;;  %397 = vst [vmem:[%s705_s28 + $0x48] sm:$0xff] %v360_v23  ;;  %v434_v53 = vmul.f32 %v360_v23, %v360_v23 }
  0xe0   : > { %v606_v22 = vpop.f32.mrf.mxu0  ;;  %v614_v28 = vpop.f32.mrf.mxu1 }
  0xe1   : > { %v405_v25 = vadd.f32 %v602_v12, %v404_v20  ;;  %v441_v26 = vadd.f32 %v426_v21, %v425_v19  ;;  %394 = vst [vmem:[%s705_s28 + $0x30] sm:$0xff] %v606_v22  ;;  %402 = vst [vmem:[%s705_s28 + $0x70] sm:$0xff] %v614_v28  ;;  %v431_v43 = vmul.f32 %v606_v22, %v606_v22 }
  0xe2   : > { %v341_v27 = vpop.f32.mrf.mxu0  ;;  %v373_v33 = vpop.f32.mrf.mxu1  ;;  %v439_v3 = vmul.f32 %v614_v28, %v614_v28 }
  0xe3   : > { %v442_v30 = vadd.f32 %v441_v26, %v427_v24  ;;  %392 = vst [vmem:[%s705_s28 + $0x20] sm:$0xff] %v341_v27  ;;  %v406_v31 = vadd.f32 %v603_v15, %v405_v25  ;;  %v429_v35 = vmul.f32 %v341_v27, %v341_v27  ;;  %400 = vst [vmem:[%s705_s28 + $0x60] sm:$0xff] %v373_v33 }
  0xe4   : > { %v607_v32 = vpop.f32.mrf.mxu0  ;;  %v615_v38 = vpop.f32.mrf.mxu1  ;;  %v437_v62 = vmul.f32 %v373_v33, %v373_v33 }
  0xe5   : > { %v407_v34 = vadd.f32 %v406_v31, %v341_v27  ;;  %v443_v36 = vadd.f32 %v442_v30, %v428_v29  ;;  %395 = vst [vmem:[%s705_s28 + $0x38] sm:$0xff] %v607_v32  ;;  %403 = vst [vmem:[%s705_s28 + $0x78] sm:$0xff] %v615_v38  ;;  %v432_v46 = vmul.f32 %v607_v32, %v607_v32 }
  0xe6   : > { %v344_v37 = vpop.f32.mrf.mxu0  ;;  %v376_v42 = vpop.f32.mrf.mxu1  ;;  %v440_v6 = vmul.f32 %v615_v38, %v615_v38 }
  0xe7   : > { %v444_v39 = vadd.f32 %v443_v36, %v429_v35  ;;  %393 = vst [vmem:[%s705_s28 + $0x28] sm:$0xff] %v344_v37  ;;  %v408_v40 = vadd.f32 %v407_v34, %v344_v37  ;;  %v430_v41 = vmul.f32 %v344_v37, %v344_v37  ;;  %401 = vst [vmem:[%s705_s28 + $0x68] sm:$0xff] %v376_v42 }
  0xe8   : > { %v438_v2 = vmul.f32 %v376_v42, %v376_v42 }
  0xe9   : > { %v409_v44 = vadd.f32 %v606_v22, %v408_v40  ;;  %v445_v45 = vadd.f32 %v444_v39, %v430_v41 }
  0xeb   : > { %v410_v47 = vadd.f32 %v607_v32, %v409_v44  ;;  %v446_v48 = vadd.f32 %v445_v45, %v431_v43 }
  0xed   : > { %v447_v50 = vadd.f32 %v446_v48, %v432_v46  ;;  %v411_v51 = vadd.f32 %v410_v47, %v357_v16 }
  0xef   : > { %v412_v52 = vadd.f32 %v411_v51, %v360_v23  ;;  %v448_v54 = vadd.f32 %v447_v50, %v433_v49 }
  0xf1   : > { %v413_v56 = vadd.f32 %v610_v14, %v412_v52  ;;  %v449_v57 = vadd.f32 %v448_v54, %v434_v53 }
  0xf3   : > { %v450_v59 = vadd.f32 %v449_v57, %v435_v55  ;;  %v414_v60 = vadd.f32 %v611_v18, %v413_v56 }
  0xf5   : > { %v415_v61 = vadd.f32 %v414_v60, %v373_v33  ;;  %v451_v63 = vadd.f32 %v450_v59, %v436_v58 }
  0xf7   : > { %v452_v0 = vadd.f32 %v451_v63, %v437_v62  ;;  %v416_v1 = vadd.f32 %v415_v61, %v376_v42 }
  0xf9   : > { %v417_v4 = vadd.f32 %v614_v28, %v416_v1  ;;  %v453_v5 = vadd.f32 %v452_v0, %v438_v2 }
  0xfb   : > { %v418_v7 = vadd.f32 %v615_v38, %v417_v4  ;;  %v454_v8 = vadd.f32 %v453_v5, %v439_v3 }
  0xfd   : > { %v419_v9 = vrot.slane %v418_v7, 4  ;;  %v455_v10 = vadd.f32 %v454_v8, %v440_v6 }
  0xff   : > { %v420_v11 = vadd.f32 %v419_v9, %v418_v7  ;;  %v456_v12 = vrot.slane %v455_v10, 4 }
 0x101   : > { %v421_v13 = vrot.slane %v420_v11, 2  ;;  %v457_v14 = vadd.f32 %v456_v12, %v455_v10 }
 0x103   : > { %v422_v15 = vadd.f32 %v421_v13, %v420_v11  ;;  %v458_v16 = vrot.slane %v457_v14, 2 }
 0x105   : > { %v423_v17 = vrot.slane %v422_v15, 1  ;;  %v459_v18 = vadd.f32 %v458_v16, %v457_v14 }
 0x107   : > { %v460_v19 = vrot.slane %v459_v18, 1  ;;  %v424_v20 = vadd.f32 %v423_v17, %v422_v15 }
 0x109   : > { %v461_v21 = vadd.f32 %v460_v19, %v459_v18 }
 0x10b   : > { %v463_v22 = vsel %vm462_vm2, %v424_v20, %v461_v21 }
 0x10c   : > { %464 = vst [vmem:[%s184_s5] sm:$0x3] %v463_v22 }
 0x10d PF: > { %s14_s12 = sadd.s32 1, %s649_s12  }
 0x10e   : > { %p11_p5 = scmp.ge.s32.totalorder %s14_s12, 6  }
 0x110   :  { %13 = sbr.rel (!%p11_p5) target bundleno = 1 (0x1), region = 70 }

</bundles_post_ra>
